<compile_context>
chip_gen: v7x
topology: tpu7x:2x2x1
jax: 0.10.0
libtpu: 0.0.40
codegen_flags: <defaults>
</compile_context>

<pallas_src>
import jax
import jax.numpy as jnp
from jax.experimental import pallas as pl
from jax.experimental.pallas import tpu as pltpu

_NEG_BIG = -1e30  # effectively -inf for padded class lanes (avoids inf arithmetic)


def _round_up(a, b):
    return (a + b - 1) // b * b


def _pad_to(arr, shape, dtype, fill=0.0):
    """Pad `arr` (top-left aligned) into a `shape`-sized array of `dtype`."""
    arr = arr.astype(dtype)
    if tuple(arr.shape) == tuple(shape):
        return arr
    out = jnp.full(shape, fill, dtype)
    return out.at[tuple(slice(0, s) for s in arr.shape)].set(arr)


def mlp_kernel(x_ref, w1_ref, b1_ref, w2_ref, b2_ref, o_ref):
    # fc1: bf16 MXU matmul, f32 accumulation; bias + ReLU in f32 (VPU).
    h = jnp.dot(x_ref[...], w1_ref[...], preferred_element_type=jnp.float32)
    h = jnp.maximum(h + b1_ref[...], 0.0)

    # fc2: cast hidden activations back to the matmul dtype for the MXU.
    logits = jnp.dot(h.astype(w2_ref.dtype), w2_ref[...],
                     preferred_element_type=jnp.float32)
    logits = logits + b2_ref[...]  # padded class lanes carry a -1e30 bias

    # LogSoftmax over the class (lane) axis.  Padded lanes are ~-inf so they drop
    # out of both the max and the exp-sum; real lanes are exact.
    m = jnp.max(logits, axis=-1, keepdims=True)
    shifted = logits - m
    lse = jnp.log(jnp.sum(jnp.exp(shifted), axis=-1, keepdims=True))
    o_ref[...] = (shifted - lse).astype(o_ref.dtype)


def mlp_forward(x, w1, b1, w2, b2, *, tm=None, matmul_dtype=jnp.bfloat16):
    """Fused fc1 -> ReLU -> fc2 -> LogSoftmax(dim=1).

    x: [N, nfeat] f32; w1: [nfeat, nhid]; b1: [nhid]; w2: [nhid, nclass]; b2: [nclass]
    (weights stored input-major, i.e. nn.Linear.weight transposed).
    """
    N, nfeat = x.shape
    nhid = w1.shape[1]
    nclass = w2.shape[1]

    # ---- lane-aligned padded shapes (f32 native tile is (8, 128)) ----
    nfeat_p = _round_up(nfeat, 128)
    nhid_p = _round_up(nhid, 128)
    nclass_p = _round_up(nclass, 128)  # lane-dense output: no masked partial stores

    # ---- batch tile: multiple of 8, bounded, >=2 grid steps when possible ----
    n_p = _round_up(N, 8)
    if tm is None:
        tm = min(512, n_p)
        if n_p // tm < 2 and n_p >= 16:
            tm = _round_up(n_p // 2, 8)  # give both v7x TensorCores work
    tm = min(tm, n_p)
    n_p = _round_up(n_p, tm)
    grid = (n_p // tm,)

    # ---- pad inputs; matmul operands in bf16, biases in f32 ----
    xm = _pad_to(x, (n_p, nfeat_p), matmul_dtype)
    w1m = _pad_to(w1, (nfeat_p, nhid_p), matmul_dtype)
    w2m = _pad_to(w2, (nhid_p, nclass_p), matmul_dtype)
    b1p = _pad_to(jnp.reshape(b1, (1, nhid)), (1, nhid_p), jnp.float32)
    # Padded class lanes get a huge negative bias -> exp underflows to 0 in the
    # log-softmax reduction, keeping real-class results exact.
    b2p = _pad_to(jnp.reshape(b2, (1, nclass)), (1, nclass_p), jnp.float32,
                  fill=_NEG_BIG)

    # ---- VMEM budget (double-buffered tiles + resident weights), capped for v7x ----
    isz = jnp.dtype(matmul_dtype).itemsize
    vmem_need = (2 * tm * nfeat_p * isz                              # x tiles (x2)
                 + 2 * tm * nclass_p * 4                             # out tiles (x2)
                 + 2 * (nfeat_p * nhid_p + nhid_p * nclass_p) * isz  # weights (x2)
                 + 2 * (nhid_p + nclass_p) * 4                       # biases (x2)
                 + 2 * tm * nhid_p * 4)                              # hidden activations
    vmem_limit = int(min(max(2 * vmem_need, 32 * 1024 * 1024), 64 * 1024 * 1024))

    flops = 2 * n_p * nfeat_p * nhid_p + 2 * n_p * nhid_p * nclass_p
    transcendentals = n_p * (nclass_p + 1)  # exp per logit + one log per row
    bytes_accessed = (xm.size * isz + w1m.size * isz + w2m.size * isz
                      + b1p.size * 4 + b2p.size * 4 + n_p * nclass_p * 4)

    out_p = pl.pallas_call(
        mlp_kernel,
        out_shape=jax.ShapeDtypeStruct((n_p, nclass_p), jnp.float32),
        grid_spec=pltpu.PrefetchScalarGridSpec(
            num_scalar_prefetch=0,
            grid=grid,
            in_specs=[
                pl.BlockSpec((tm, nfeat_p), lambda i: (i, 0)),       # x tile (streams)
                pl.BlockSpec((nfeat_p, nhid_p), lambda i: (0, 0)),   # W1 (resident)
                pl.BlockSpec((1, nhid_p), lambda i: (0, 0)),         # b1 (resident)
                pl.BlockSpec((nhid_p, nclass_p), lambda i: (0, 0)),  # W2 (resident)
                pl.BlockSpec((1, nclass_p), lambda i: (0, 0)),       # b2 (resident)
            ],
            out_specs=pl.BlockSpec((tm, nclass_p), lambda i: (i, 0)),
        ),
        compiler_params=pltpu.CompilerParams(
            dimension_semantics=("parallel",),
            vmem_limit_bytes=vmem_limit,
        ),
        cost_estimate=pl.CostEstimate(
            flops=flops,
            transcendentals=transcendentals,
            bytes_accessed=bytes_accessed,
        ),
    )(xm, w1m, b1p, w2m, b2p)

    # Slice off the batch / class padding.
    return out_p[:N, :nclass]


if __name__ == "__main__":
    # Small deterministic problem consistent with MLP(nfeat, nhid, nclass).
    N, nfeat, nhid, nclass = 64, 16, 32, 8

    key = jax.random.PRNGKey(0)
    kx, k1, kb1, k2, kb2 = jax.random.split(key, 5)

    x = jax.random.normal(kx, (N, nfeat), dtype=jnp.float32)
    lim1 = 1.0 / jnp.sqrt(nfeat)
    lim2 = 1.0 / jnp.sqrt(nhid)
    w1 = jax.random.uniform(k1, (nfeat, nhid), jnp.float32, -lim1, lim1)
    b1 = jax.random.uniform(kb1, (nhid,), jnp.float32, -lim1, lim1)
    w2 = jax.random.uniform(k2, (nhid, nclass), jnp.float32, -lim2, lim2)
    b2 = jax.random.uniform(kb2, (nclass,), jnp.float32, -lim2, lim2)

    out = jax.block_until_ready(mlp_forward(x, w1, b1, w2, b2))
    assert out.shape == (N, nclass)

    # Reference 1: same math path as the kernel (bf16 matmul inputs, f32 accum).
    xb, w1b, w2b = (t.astype(jnp.bfloat16) for t in (x, w1, w2))
    h_ref = jnp.maximum(
        jnp.dot(xb, w1b, preferred_element_type=jnp.float32) + b1, 0.0)
    logits_ref = jnp.dot(h_ref.astype(jnp.bfloat16), w2b,
                         preferred_element_type=jnp.float32) + b2
    ref_bf16 = jax.nn.log_softmax(logits_ref, axis=1)
    assert jnp.allclose(out, ref_bf16, atol=1e-3, rtol=1e-3), "mismatch vs bf16 ref"

    # Reference 2: full-precision PyTorch-equivalent forward (loose tolerance
    # covers the bf16 matmul rounding).
    ref_f32 = jax.nn.log_softmax(jnp.maximum(x @ w1 + b1, 0.0) @ w2 + b2, axis=1)
    assert jnp.allclose(out, ref_f32, atol=5e-2, rtol=5e-2), "mismatch vs f32 ref"

    print("KERNEL_OK")
</pallas_src>

<mosaic_0001>
module attributes {stable_mosaic.version = 11 : i64} {
  func.func @mlp_kernel(%arg0: i32, %arg1: memref<32x128xbf16, #tpu.memory_space<vmem>>, %arg2: memref<128x128xbf16, #tpu.memory_space<vmem>>, %arg3: memref<1x128xf32, #tpu.memory_space<vmem>>, %arg4: memref<128x128xbf16, #tpu.memory_space<vmem>>, %arg5: memref<1x128xf32, #tpu.memory_space<vmem>>, %arg6: memref<32x128xf32, #tpu.memory_space<vmem>>) attributes {dimension_semantics = [#tpu.dimension_semantics<parallel>], iteration_bounds = array<i64: 2>, scalar_prefetch = 0 : i64, scratch_operands = 0 : i64, tpu.core_type = #tpu.core_type<tc>, window_params = [{transform_indices = @transform_0, window_bounds = array<i64: 32, 128>}, {pipeline_mode = #tpu.pipeline_mode<synchronous>, transform_indices = @transform_1, window_bounds = array<i64: 128, 128>}, {pipeline_mode = #tpu.pipeline_mode<synchronous>, transform_indices = @transform_2, window_bounds = array<i64: 1, 128>}, {pipeline_mode = #tpu.pipeline_mode<synchronous>, transform_indices = @transform_3, window_bounds = array<i64: 128, 128>}, {pipeline_mode = #tpu.pipeline_mode<synchronous>, transform_indices = @transform_4, window_bounds = array<i64: 1, 128>}, {transform_indices = @transform_5, window_bounds = array<i64: 32, 128>}]} {
    %c0 = arith.constant 0 : index
    %c0_0 = arith.constant 0 : index
    %0 = vector.load %arg1[%c0, %c0_0] : memref<32x128xbf16, #tpu.memory_space<vmem>>, vector<32x128xbf16>
    %c0_1 = arith.constant 0 : index
    %c0_2 = arith.constant 0 : index
    %1 = vector.load %arg2[%c0_1, %c0_2] : memref<128x128xbf16, #tpu.memory_space<vmem>>, vector<128x128xbf16>
    %cst = arith.constant dense<0.000000e+00> : vector<32x128xf32>
    %2 = tpu.matmul %0, %1, %cst {dimension_numbers = #tpu.dot_dimension_numbers<[1], [0], [0], [1], [0, 0, 1, 1], [], []>} : vector<32x128xbf16>, vector<128x128xbf16>, vector<32x128xf32> -> vector<32x128xf32>
    %c0_3 = arith.constant 0 : index
    %c0_4 = arith.constant 0 : index
    %3 = vector.load %arg3[%c0_3, %c0_4] : memref<1x128xf32, #tpu.memory_space<vmem>>, vector<1x128xf32>
    %4 = vector.broadcast %3 : vector<1x128xf32> to vector<32x128xf32>
    %5 = arith.addf %2, %4 : vector<32x128xf32>
    %cst_5 = arith.constant 0.000000e+00 : f32
    %6 = vector.broadcast %cst_5 : f32 to vector<32x128xf32>
    %7 = arith.maximumf %5, %6 : vector<32x128xf32>
    %8 = arith.truncf %7 : vector<32x128xf32> to vector<32x128xbf16>
    %c0_6 = arith.constant 0 : index
    %c0_7 = arith.constant 0 : index
    %9 = vector.load %arg4[%c0_6, %c0_7] : memref<128x128xbf16, #tpu.memory_space<vmem>>, vector<128x128xbf16>
    %cst_8 = arith.constant dense<0.000000e+00> : vector<32x128xf32>
    %10 = tpu.matmul %8, %9, %cst_8 {dimension_numbers = #tpu.dot_dimension_numbers<[1], [0], [0], [1], [0, 0, 1, 1], [], []>} : vector<32x128xbf16>, vector<128x128xbf16>, vector<32x128xf32> -> vector<32x128xf32>
    %c0_9 = arith.constant 0 : index
    %c0_10 = arith.constant 0 : index
    %11 = vector.load %arg5[%c0_9, %c0_10] : memref<1x128xf32, #tpu.memory_space<vmem>>, vector<1x128xf32>
    %12 = vector.broadcast %11 : vector<1x128xf32> to vector<32x128xf32>
    %13 = arith.addf %10, %12 : vector<32x128xf32>
    %cst_11 = arith.constant dense<0xFF800000> : vector<32xf32>
    %14 = vector.multi_reduction <maximumf>, %13, %cst_11 [1] : vector<32x128xf32> to vector<32xf32>
    %15 = vector.shape_cast %14 : vector<32xf32> to vector<32x1xf32>
    %16 = vector.broadcast %15 : vector<32x1xf32> to vector<32x128xf32>
    %17 = arith.subf %13, %16 : vector<32x128xf32>
    %18 = math.exp %17 : vector<32x128xf32>
    %cst_12 = arith.constant dense<0.000000e+00> : vector<32xf32>
    %19 = vector.multi_reduction <add>, %18, %cst_12 [1] : vector<32x128xf32> to vector<32xf32>
    %20 = vector.shape_cast %19 : vector<32xf32> to vector<32x1xf32>
    %21 = math.log %20 : vector<32x1xf32>
    %22 = vector.broadcast %21 : vector<32x1xf32> to vector<32x128xf32>
    %23 = arith.subf %17, %22 : vector<32x128xf32>
    %c0_13 = arith.constant 0 : index
    %c0_14 = arith.constant 0 : index
    %24 = vector.load %arg6[%c0_13, %c0_14] : memref<32x128xf32, #tpu.memory_space<vmem>>, vector<32x128xf32>
    tpu.vector_store %arg6[%c0_13, %c0_14], %23 {strides = array<i32>} : memref<32x128xf32, #tpu.memory_space<vmem>>, vector<32x128xf32>,
    return
  }
  func.func @transform_0(%arg0: i32) -> (i32, i32) {
    %c0_i32 = arith.constant 0 : i32
    %c0_i32_0 = arith.constant 0 : i32
    return %arg0, %c0_i32 : i32, i32
  }
  func.func @transform_1(%arg0: i32) -> (i32, i32) {
    %c0_i32 = arith.constant 0 : i32
    %c0_i32_0 = arith.constant 0 : i32
    %c0_i32_1 = arith.constant 0 : i32
    return %c0_i32, %c0_i32_0 : i32, i32
  }
  func.func @transform_2(%arg0: i32) -> (i32, i32) {
    %c0_i32 = arith.constant 0 : i32
    %c0_i32_0 = arith.constant 0 : i32
    %c0_i32_1 = arith.constant 0 : i32
    return %c0_i32, %c0_i32_0 : i32, i32
  }
  func.func @transform_3(%arg0: i32) -> (i32, i32) {
    %c0_i32 = arith.constant 0 : i32
    %c0_i32_0 = arith.constant 0 : i32
    %c0_i32_1 = arith.constant 0 : i32
    return %c0_i32, %c0_i32_0 : i32, i32
  }
  func.func @transform_4(%arg0: i32) -> (i32, i32) {
    %c0_i32 = arith.constant 0 : i32
    %c0_i32_0 = arith.constant 0 : i32
    %c0_i32_1 = arith.constant 0 : i32
    return %c0_i32, %c0_i32_0 : i32, i32
  }
  func.func @transform_5(%arg0: i32) -> (i32, i32) {
    %c0_i32 = arith.constant 0 : i32
    %c0_i32_0 = arith.constant 0 : i32
    return %arg0, %c0_i32 : i32, i32
  }
}

</mosaic_0001>

<bundles_post_ra>
// kernel: tpu_custom_call.1
= control target key start
LH: loop header
LB: loop body
LE: loop exit
PB: predicated region body
PF: predicated region fallthrough
CT: control target
= control target key end

     0   :  { %10 = vsyncpa [#allocation3], 0  ;;  %s1342_s0 = inlined_call_operand.hbm [shape: bf16[64,128], index: 0, kind: input, shape index: {}]   ;;  %s1343_s1 = inlined_call_operand.hbm [shape: bf16[128,128], index: 1, kind: input, shape index: {}]   ;;  %s1344_s2 = inlined_call_operand.vmem [shape: f32[1,128], index: 2, kind: input, shape index: {}]   ;;  %s1345_s3 = inlined_call_operand.hbm [shape: bf16[128,128], index: 3, kind: input, shape index: {}]   ;;  %s1346_s4 = inlined_call_operand.vmem [shape: f32[1,128], index: 4, kind: input, shape index: {}]   ;;  %s1347_s5 = inlined_call_operand.hbm [shape: f32[64,128], index: 5, kind: output, shape index: {}]  }
   0x1   :  { %12 = vsyncpa [#allocation3 + $0x1], 0 }
   0x2   :  { %13 = vsyncpa [#allocation6], 0 }
   0x3   :  { %14 = vsyncpa [#allocation4], 0 }
   0x4   :  { %16 = vsyncpa [#allocation4 + $0x1], 0  ;;  %s1088_s18 = smov 0   ;;  %s1090_s19 = smov 0  }
   0x5   :  { %s1092_s20 = smov 0   ;;  %s1094_s21 = smov 0  }
   0x6 LB: > { %s1109_s22 = sadd.s32 4294967295, %s1048_s21   ;;  %s687_s23 = sadd.s32 4294967294, %s1048_s21   ;;  %s1048_s21 = sphi %s1094_s21, %s1367_s21   ;;  %s1044_s20 = sphi %s1092_s20, %s1366_s20   ;;  %s1040_s19 = sphi %s1090_s19, %s1365_s19   ;;  %s1036_s18 = sphi %s1088_s18, %s1364_s18  }
   0x7   : > { %p42_p0 = scmp.ne.s32.totalorder %s1040_s19, %s1036_s18  ;;  %p1348_p1 = scmp.eq.s32.totalorder %s1109_s22, 0 }
   0x8   : > { %p156_p3 = scmp.eq.s32.totalorder %s687_s23, 1  ;;  %p688_p5 = scmp.ge.s32.totalorder %s1048_s21, 1 }
   0x9   : > { %p1118_p4 = por %p1348_p1, %p42_p0  ;;  %p163_p7 = scmp.lt.s32.totalorder %s1048_s21, 3 }
   0xa   : > { %p1123_p6 = por %p156_p3, %p42_p0  ;;  %s1050_s27 = smov [#allocation5]  }
   0xb   : > { %s1351_s24 = scalar_select %p1118_p4, 1, 0 }
   0xc   : > { %s1352_s25 = scalar_select %p1123_p6, 1, 0 }
   0xd   : > { %p1128_p8 = pnand %p688_p5, %p163_p7  ;;  %s175_s28 = sshll.u32 %s1050_s27, 4  ;;  %s1132_s28 = int_to_ptr.vmem [resolvable:$true] %s175_s28 }
   0xe   : > { %s1051_s30 = smov [#allocation7]   ;;  %s892_s9 = scalar_lea.hbm %s1343_s1, 1024 }
   0xf   : > { %p799_p9 = pneg %p1128_p8  ;;  %s191_s6 = sshll.u32 %s1051_s30, 4  ;;  %s1143_s6 = int_to_ptr.vmem [resolvable:$true] %s191_s6 }
  0x10   : > { %p893_p12 = scmp.ne.s32.totalorder %s1343_s1, %s892_s9  ;;  %p899_p5 = scmp.lt.u32.totalorder %s892_s9, %s1343_s1 }
  0x11   : > { %p1139_p11 = pnand %p799_p9, %p1348_p1 }
  0x13   : > { %p894_p13 = pneg %p1139_p11 }
  0x15   : > { %p895_p0 = pnand %p894_p13, %p893_p12 }
  0x17   : > { %p896_p3 = pneg %p895_p0 }
  0x19   : > { %p901_p7 = pnand %p899_p5, %p896_p3 }
  0x1b   : > { %904 = shalt.err (!%p901_p7)
}
  0x1c   : > { %s905_s14 = scalar_lea.vmem %s1132_s28, 1024  ;;  %p913_p2 = scmp.lt.s32.totalorder %s1132_s28, %s1132_s28 }
  0x1d   : > { %p906_p9 = scmp.ne.s32.totalorder %s1132_s28, %s905_s14  ;;  %p914_p12 = scmp.lt.s32.totalorder %s905_s14, %s905_s14 }
  0x1f   : > { %p908_p10 = pnand %p906_p9, %p894_p13  ;;  %p915_p0 = por %p914_p12, %p913_p2 }
  0x21   : > { %p909_p1 = pneg %p908_p10 }
  0x23   : > { %p916_p6 = pnand %p915_p0, %p909_p1 }
  0x25   : > { %919 = shalt.err (!%p916_p6)
}
  0x26   : > { %s1052_s15 = smov 64   ;;  %s1053_s16 = smov 4  }
  0x27   : > { %802 = dma.hbm_to_vmem [thread:$0]  (!%p1139_p11), %s1343_s1, 1024, %s1132_s28, [#allocation6], %s1052_s15, %s1052_s15, %s1053_s16  }
  0x28   : > { %s920_s7 = scalar_lea.hbm %s1345_s3, 1024 }
  0x29   : > { %p921_p1 = scmp.ne.s32.totalorder %s1345_s3, %s920_s7  ;;  %p927_p10 = scmp.lt.u32.totalorder %s920_s7, %s1345_s3 }
  0x2b   : > { %p923_p2 = pnand %p921_p1, %p894_p13 }
  0x2d   : > { %p924_p6 = pneg %p923_p2 }
  0x2f   : > { %p929_p3 = pnand %p927_p10, %p924_p6 }
  0x31   : > { %932 = shalt.err (!%p929_p3)
}
  0x32   : > { %s933_s28 = scalar_lea.vmem %s1143_s6, 1024  ;;  %p941_p12 = scmp.lt.s32.totalorder %s1143_s6, %s1143_s6 }
  0x33   : > { %p934_p5 = scmp.ne.s32.totalorder %s1143_s6, %s933_s28  ;;  %p942_p0 = scmp.lt.s32.totalorder %s933_s28, %s933_s28 }
  0x35   : > { %p936_p7 = pnand %p934_p5, %p894_p13  ;;  %p943_p1 = por %p942_p0, %p941_p12 }
  0x37   : > { %p937_p9 = pneg %p936_p7 }
  0x39   : > { %p944_p2 = pnand %p943_p1, %p937_p9 }
  0x3b   : > { %947 = shalt.err (!%p944_p2)
}
  0x3c   : > { %805 = dma.hbm_to_vmem [thread:$0]  (!%p1139_p11), %s1345_s3, 1024, %s1143_s6, [#allocation6], %s1052_s15, %s1052_s15, %s1053_s16  }
  0x3d   : > { %s1204_s29 = sadd.s32 1, %s1048_s21   ;;  %s29_s14 = sadd.s32 1, %s1044_s20 }
  0x3e   : > { %s26_s17 = ssub.s32 %s1048_s21, %s1204_s29  ;;  %p36_p13 = scmp.ne.s32.totalorder %s1044_s20, %s1040_s19 }
  0x3f   : > { %p27_p6 = scmp.eq.s32.totalorder %s26_s17, 0  ;;  %p37_p10 = scmp.eq.s32.totalorder %s1048_s21, 0 }
  0x40   : > { %p1355_p3 = scmp.eq.s32.totalorder %s1109_s22, 1  ;;  %p816_p7 = scmp.lt.s32.totalorder %s1048_s21, 2 }
  0x41   : > { %s1220_s27 = scalar_select %p27_p6, %s1044_s20, %s29_s14  }
  0x42   : > { %p1214_p5 = por %p1355_p3, %p36_p13  ;;  %p38_p9 = por %p37_p10, %p36_p13 }
  0x43   : > { %s208_s30 = sand.u32 1, %s1044_s20   ;;  %s725_s6 = sshll.u32 %s1048_s21, 8 }
  0x44   : > { %s1356_s23 = scalar_select %p1214_p5, 1, 0 }
  0x45   : > { %s692_s7 = sshll.u32 %s208_s30, 4  ;;  %s1227_s10 = scalar_lea.hbm %s1342_s0, %s725_s6 }
  0x46   : > { %s212_s11 = scalar_lea.vmem [#allocation2], %s692_s7  ;;  %p1231_p11 = pnand %p816_p7, %p38_p9 }
  0x47   : > { %s219_s28 = sshll.u32 %s212_s11, 4  ;;  %s1235_s13 = scalar_lea.sflag [#allocation3], %s208_s30  ;;  %s1229_s28 = int_to_ptr.vmem [resolvable:$true] %s219_s28 }
  0x48   : > { %s948_s14 = scalar_lea.hbm %s1227_s10, 256  ;;  %p950_p0 = pneg %p1231_p11 }
  0x49   : > { %p949_p12 = scmp.ne.s32.totalorder %s1227_s10, %s948_s14  ;;  %s953_s6 = scalar_lea.hbm %s1342_s0, 512 }
  0x4a   : > { %p954_p13 = scmp.lt.u32.totalorder %s1227_s10, %s1342_s0  ;;  %p955_p6 = scmp.lt.u32.totalorder %s953_s6, %s948_s14 }
  0x4b   : > { %p951_p1 = pnand %p950_p0, %p949_p12  ;;  %p957_p3 = scmp.lt.u32.totalorder %s948_s14, %s1227_s10 }
  0x4c   : > { %p956_p10 = por %p955_p6, %p954_p13 }
  0x4d   : > { %p952_p2 = pneg %p951_p1 }
  0x4e   : > { %p958_p7 = por %p957_p3, %p956_p10 }
  0x50   : > { %p959_p9 = pnand %p958_p7, %p952_p2 }
  0x52   : > { %962 = shalt.err (!%p959_p9)
}
  0x53   : > { %s963_s30 = scalar_lea.vmem %s1229_s28, 256  ;;  %s1054_s11 = smov [#allocation2]  }
  0x54   : > { %p964_p12 = scmp.ne.s32.totalorder %s1229_s28, %s963_s30  ;;  %s968_s17 = sshll.u32 %s1054_s11, 4  ;;  %s969_s17 = int_to_ptr.vmem [resolvable:$false] %s968_s17 }
  0x55   : > { %s970_s7 = scalar_lea.vmem %s969_s17, 512  ;;  %p971_p4 = scmp.lt.s32.totalorder %s1229_s28, %s969_s17 }
  0x56   : > { %p966_p1 = pnand %p964_p12, %p950_p0  ;;  %p972_p13 = scmp.lt.s32.totalorder %s970_s7, %s963_s30 }
  0x58   : > { %p967_p5 = pneg %p966_p1  ;;  %p973_p6 = por %p972_p13, %p971_p4 }
  0x5a   : > { %p974_p10 = pnand %p973_p6, %p967_p5 }
  0x5c   : > { %977 = shalt.err (!%p974_p10)
}
  0x5d   : > { %809 = dma.hbm_to_vmem [thread:$0]  (!%p1231_p11), %s1227_s10, 256, %s1229_s28, %s1235_s13, %s1052_s15, %s1052_s15, %s1053_s16  }
  0x5e   : > { %231 = sbr.rel (%p1128_p8) target bundleno = 912 (0x390), region = 40  ;;  %s1269_s14 = sand.u32 (!%p1128_p8), 1, %s1040_s19  }
  0x5f   : > { %s696_s6 = sshll.u32 (!%p1128_p8), %s1269_s14, 4  ;;  %s234_s8 = scalar_lea.sflag (!%p1128_p8), [#allocation3], %s1269_s14 }
  0x60   : > { %s1273_s9 = scalar_lea.vmem (!%p1128_p8), [#allocation2], %s696_s6  ;;  %p1358_p4 = scmp.ne.s32.totalorder (!%p1128_p8), %s1351_s24, 0 }
  0x65   : > { %1023 = dma.done.wait (%p1358_p4), %s234_s8, 256  }
  0x66   : > { %1025 = vsyncadd (%p1358_p4), %s234_s8, 4294967040  ;;  %p1359_p5 = scmp.eq.s32.totalorder %s1109_s22, 0 }
  0x68   : > { %1027 = dma.done.wait (%p1359_p5), [#allocation6], 2048   ;;  %p1360_p8 = pmov %p1359_p5 }
  0x69   : > { %v858_v0 = vld [vmem:[#allocation5] sm:$0xff]   ;;  %v859_v1 = vld [vmem:[#allocation5 + $0x8] sm:$0xff]   ;;  %v860_v2 = vld [vmem:[#allocation5 + $0x10] sm:$0xff]   ;;  %s699_s10 = sshll.u32 %s1269_s14, 5  ;;  %s726_s13 = sshll.u32 %s1109_s22, 9 }
  0x6a   : > { %1029 = vsyncadd (%p1360_p8), [#allocation6], 4294965248  ;;  %747 = vmatprep.subr.bf16.mxu0 %v858_v0  ;;  %v861_v3 = vld [vmem:[#allocation5 + $0x18] sm:$0xff]   ;;  %v866_v4 = vld [vmem:[%s1273_s9] sm:$0xff]   ;;  %s271_s28 = scalar_lea.vmem [#allocation8], %s699_s10  ;;  %s1298_s17 = scalar_lea.hbm %s1347_s5, %s726_s13 }
  0x6b   : > { %748 = vmatpush3.bf16.msra.mxu0 %v858_v0  ;;  %763 = vmatprep.mubr.bf16.mxu0 %v866_v4  ;;  %v868_v5 = vld [vmem:[#allocation7] sm:$0xff]   ;;  %v869_v6 = vld [vmem:[#allocation7 + $0x8] sm:$0xff]   ;;  %v870_v8 = vld [vmem:[#allocation7 + $0x10] sm:$0xff]   ;;  %s595_s12 = sshll.u32 %s271_s28, 4  ;;  %s582_s7 = scalar_lea.sflag [#allocation4], %s1269_s14  ;;  %s1293_s12 = int_to_ptr.vmem [resolvable:$true] %s595_s12 }
  0x6c   : > { %749 = vmatprep.subr.bf16.mxu0 %v859_v1  ;;  %v862_v7 = vld [vmem:[#allocation5 + $0x20] sm:$0xff]   ;;  %767 = vmatprep.subr.bf16.mxu1 %v868_v5  ;;  %v863_v9 = vld [vmem:[#allocation5 + $0x28] sm:$0xff]   ;;  %v871_v10 = vld [vmem:[#allocation7 + $0x18] sm:$0xff]   ;;  %s978_s6 = scalar_lea.vmem %s1293_s12, 512  ;;  %p1361_p0 = scmp.ne.s32.totalorder %s1356_s23, 0 }
  0x6d   : > { %768 = vmatpush3.bf16.msra.mxu1 %v868_v5  ;;  %v864_v11 = vld [vmem:[#allocation5 + $0x30] sm:$0xff]   ;;  %v872_v12 = vld [vmem:[#allocation7 + $0x20] sm:$0xff]   ;;  %v865_v13 = vld [vmem:[#allocation5 + $0x38] sm:$0xff]   ;;  %p979_p11 = scmp.ne.s32.totalorder %s1293_s12, %s978_s6  ;;  %s1055_s22 = smov [#allocation8]  }
  0x6e   : > { %769 = vmatprep.subr.bf16.mxu1 %v869_v6  ;;  %v873_v14 = vld [vmem:[#allocation7 + $0x28] sm:$0xff]   ;;  %v874_v16 = vld [vmem:[#allocation7 + $0x30] sm:$0xff]   ;;  %v875_v17 = vld [vmem:[#allocation7 + $0x38] sm:$0xff]   ;;  %s982_s8 = sshll.u32 %s1055_s22, 4  ;;  %s983_s8 = int_to_ptr.vmem [resolvable:$false] %s982_s8 }
  0x6f   : > { %750 = vmatpush3.bf16.msra.mxu0 %v859_v1  ;;  %v867_v15 = vld [vmem:[%s1273_s9 + $0x8] sm:$0xff]   ;;  %v700_v18 = vld [vmem:[%s1344_s2] ss:$0 sm:$0xff]  ;;  %p980_p2 = pnand %p979_p11, %p1361_p0  ;;  %s984_s9 = scalar_lea.vmem %s983_s8, 1024 }
  0x70   : > { %751 = vmatprep.subr.bf16.mxu0 %v860_v2  ;;  %v711_v33 = vld [vmem:[%s1346_s4] ss:$0 sm:$0xff]  ;;  %p985_p7 = scmp.lt.s32.totalorder %s1293_s12, %s983_s8  ;;  %p986_p9 = scmp.lt.s32.totalorder %s984_s9, %s978_s6 }
  0x71   : > { %770 = vmatpush3.bf16.msra.mxu1 %v869_v6  ;;  %p981_p3 = pneg %p980_p2 }
  0x72   : > { %771 = vmatprep.subr.bf16.mxu1 %v870_v8  ;;  %p987_p12 = por %p986_p9, %p985_p7 }
  0x73   : > { %752 = vmatpush3.bf16.msra.mxu0 %v860_v2 }
  0x74   : > { %753 = vmatprep.subr.bf16.mxu0 %v861_v3  ;;  %p988_p1 = pnand %p987_p12, %p981_p3 }
  0x75   : > { %772 = vmatpush3.bf16.msra.mxu1 %v870_v8 }
  0x76   : > { %773 = vmatprep.subr.bf16.mxu1 %v871_v10 }
  0x77   : > { %754 = vmatpush3.bf16.msra.mxu0 %v861_v3 }
  0x78   : > { %755 = vmatprep.subr.bf16.mxu0 %v862_v7 }
  0x79   : > { %774 = vmatpush3.bf16.msra.mxu1 %v871_v10 }
  0x7a   : > { %775 = vmatprep.subr.bf16.mxu1 %v872_v12 }
  0x7b   : > { %756 = vmatpush3.bf16.msra.mxu0 %v862_v7 }
  0x7c   : > { %757 = vmatprep.subr.bf16.mxu0 %v863_v9 }
  0x7d   : > { %776 = vmatpush3.bf16.msra.mxu1 %v872_v12 }
  0x7e   : > { %777 = vmatprep.subr.bf16.mxu1 %v873_v14 }
  0x7f   : > { %758 = vmatpush3.bf16.msra.mxu0 %v863_v9 }
  0x80   : > { %759 = vmatprep.subr.bf16.mxu0 %v864_v11 }
  0x81   : > { %778 = vmatpush3.bf16.msra.mxu1 %v873_v14 }
  0x82   : > { %779 = vmatprep.subr.bf16.mxu1 %v874_v16 }
  0x83   : > { %760 = vmatpush3.bf16.msra.mxu0 %v864_v11 }
  0x84   : > { %761 = vmatprep.subr.bf16.mxu0 %v865_v13 }
  0x85   : > { %780 = vmatpush3.bf16.msra.mxu1 %v874_v16 }
  0x86   : > { %781 = vmatprep.subr.bf16.mxu1 %v875_v17 }
  0x87   : > { %762 = vmatpush3.bf16.msra.mxu0 %v865_v13 }
  0x89   : > { %782 = vmatpush3.bf16.msra.mxu1 %v875_v17 }
  0x8a   : > { %764 = vmatmul.mubr.bf16.vlgmr.msra.gmra.mrb[0].mxu0 %v867_v15 }
 0x15d   : > { %v765_v19 = vpop.f32.mrb[0].mxu0 }
 0x15e   : > { %v405_v20 = vadd.f32 %v765_v19, %v700_v18  ;;  %v396_v21 = vpop.f32.mrb[1].mxu0 }
 0x15f   : > { %v397_v22 = vadd.f32 %v700_v18, %v396_v21  ;;  %v766_v23 = vpop.f32.mrb[2].mxu0 }
 0x160   : > { %v408_v24 = vadd.f32 %v766_v23, %v700_v18  ;;  %v399_v25 = vpop.f32.mrb[3].mxu0  ;;  %v413_v27 = vmax.f32 %v405_v20, 0.0 }
 0x161   : > { %v400_v26 = vadd.f32 %v700_v18, %v399_v25  ;;  %v411_v29 = vmax.f32 %v397_v22, 0.0 }
 0x162   : > { %v414_v28 = vmax.f32 %v408_v24, 0.0 }
 0x163   : > { %v412_v30 = vmax.f32 %v400_v26, 0.0 }
 0x164   : > { %v416_v31 = vpack.c.bf16 %v414_v28, %v413_v27 }
 0x165   : > { %v415_v32 = vpack.c.bf16 %v412_v30, %v411_v29 }
 0x167   : > { %783 = vmatprep.mubr.bf16.mxu1 %v415_v32 }
 0x168   : > { %784 = vmatmul.mubr.bf16.vlgmr.msra.gmra.mrb[0].mxu1 %v416_v31 }
 0x23b   : > { %v785_v34 = vpop.f32.mrb[0].mxu1 }
 0x23c   : > { %v531_v35 = vadd.f32 %v785_v34, %v711_v33  ;;  %v522_v36 = vpop.f32.mrb[1].mxu1 }
 0x23d   : > { %v523_v37 = vadd.f32 %v711_v33, %v522_v36  ;;  %v786_v38 = vpop.f32.mrb[2].mxu1 }
 0x23e   : > { %541 = vmax.xlane.f32.xlu1 %v531_v35  ;;  %v525_v39 = vpop.f32.mrb[3].mxu1  ;;  %v534_v40 = vadd.f32 %v786_v38, %v711_v33 }
 0x23f   : > { %537 = vmax.xlane.f32.xlu0 %v523_v37  ;;  %v526_v41 = vadd.f32 %v711_v33, %v525_v39 }
 0x242   : > { %543 = vmax.xlane.f32.xlu1 %v534_v40 }
 0x243   : > { %539 = vmax.xlane.f32.xlu0 %v526_v41 }
 0x2cb   : > { %v542_v42 = vpop.xlane.xlu1 %541 }
 0x2cc   : > { %v547_v43 = vsub.f32 %v531_v35, %v542_v42  ;;  %v538_v44 = vpop.xlane.xlu0 %537 }
 0x2cd   : > { %v545_v45 = vsub.f32 %v523_v37, %v538_v44 }
 0x2ce   : > { %v553_v48 = vmul.f32 1.442695, %v547_v43 }
 0x2cf   : > { %v549_v46 = vmul.f32 1.442695, %v545_v45  ;;  %v544_v47 = vpop.xlane.xlu1 %543 }
 0x2d0   : > { %v540_v49 = vpop.xlane.xlu0 %539  ;;  %v548_v50 = vsub.f32 %v534_v40, %v544_v47 }
 0x2d1   : > { %876 = vpow2.f32 %v549_v46  ;;  %v546_v51 = vsub.f32 %v526_v41, %v540_v49 }
 0x2d2   : > { %878 = vpow2.f32 %v553_v48  ;;  %v555_v53 = vmul.f32 1.442695, %v548_v50 }
 0x2d3   : > { %v551_v52 = vmul.f32 1.442695, %v546_v51 }
 0x2d5   : > { %880 = vpow2.f32 %v551_v52 }
 0x2d6   : > { %882 = vpow2.f32 %v555_v53 }
 0x2db   : > { %v877_v54 = vpop.eup %876 }
 0x2dc   : > { %557 = vadd.xlane.f32.xlu0 %v877_v54  ;;  %v879_v55 = vpop.eup %878 }
 0x2df   : > { %v881_v56 = vpop.eup %880 }
 0x2e0   : > { %561 = vadd.xlane.f32.xlu0 %v879_v55  ;;  %559 = vadd.xlane.f32.xlu1 %v881_v56  ;;  %v883_v57 = vpop.eup %882 }
 0x2e4   : > { %563 = vadd.xlane.f32.xlu1 %v883_v57 }
 0x369   : > { %v558_v58 = vpop.xlane.xlu0 %557 }
 0x36a   : > { %884 = vlog2.f32 %v558_v58 }
 0x36d   : > { %v560_v59 = vpop.xlane.xlu1 %559  ;;  %v562_v60 = vpop.xlane.xlu0 %561 }
 0x36e   : > { %886 = vlog2.f32 %v560_v59 }
 0x36f   : > { %888 = vlog2.f32 %v562_v60 }
 0x371   : > { %v564_v61 = vpop.xlane.xlu1 %563 }
 0x372   : > { %890 = vlog2.f32 %v564_v61 }
 0x374   : > { %v885_v62 = vpop.eup %884 }
 0x375   : > { %v566_v63 = vmul.f32 0.6931472, %v885_v62 }
 0x377   : > { %v573_v0 = vsub.f32 %v545_v45, %v566_v63 }
 0x378   : > { %v887_v1 = vpop.eup %886 }
 0x379   : > { %v889_v2 = vpop.eup %888  ;;  %577 = vst [vmem:[%s271_s28] sm:$0xff] %v573_v0  ;;  %v568_v3 = vmul.f32 0.6931472, %v887_v1 }
 0x37a   : > { %v570_v4 = vmul.f32 0.6931472, %v889_v2 }
 0x37b   : > { %v574_v5 = vsub.f32 %v546_v51, %v568_v3 }
 0x37c   : > { %v891_v6 = vpop.eup %890  ;;  %v575_v7 = vsub.f32 %v547_v43, %v570_v4 }
 0x37d   : > { %578 = vst [vmem:[%s271_s28 + $0x8] sm:$0xff] %v574_v5  ;;  %v572_v8 = vmul.f32 0.6931472, %v891_v6 }
 0x37e   : > { %579 = vst [vmem:[%s271_s28 + $0x10] sm:$0xff] %v575_v7 }
 0x37f   : > { %v576_v9 = vsub.f32 %v548_v50, %v572_v8 }
 0x381   : > { %580 = vst [vmem:[%s271_s28 + $0x18] sm:$0xff] %v576_v9 }
 0x382   : > { %991 = shalt.err (!%p988_p1)
}
 0x383   : > { %s992_s24 = scalar_lea.hbm %s1298_s17, 512  ;;  %s996_s16 = scalar_lea.hbm %s1347_s5, 1024 }
 0x384   : > { %p993_p13 = scmp.ne.s32.totalorder %s1298_s17, %s992_s24  ;;  %p997_p4 = scmp.lt.u32.totalorder %s1298_s17, %s1347_s5 }
 0x385   : > { %p998_p5 = scmp.lt.u32.totalorder %s996_s16, %s992_s24  ;;  %p1000_p11 = scmp.lt.u32.totalorder %s992_s24, %s1298_s17 }
 0x386   : > { %p994_p6 = pnand %p993_p13, %p1361_p0 }
 0x387   : > { %p999_p8 = por %p998_p5, %p997_p4 }
 0x388   : > { %p995_p10 = pneg %p994_p6 }
 0x389   : > { %p1001_p2 = por %p1000_p11, %p999_p8 }
 0x38b   : > { %p1002_p3 = pnand %p1001_p2, %p995_p10 }
 0x38d   : > { %1005 = shalt.err (!%p1002_p3)
}
 0x38e   : > { %s1056_s13 = smov 128   ;;  %s1057_s30 = smov 8  }
 0x38f   : > { %797 = dma.vmem_to_hbm [thread:$0]  (%p1361_p0), %s1293_s12, 512, %s1298_s17, %s582_s7, %s1056_s13, %s1056_s13, %s1057_s30  }
 0x390 PF: > { %s610_s11 = sand.u32 1, %s1036_s18   ;;  %p1362_p7 = scmp.ne.s32.totalorder %s1352_s25, 0 }
 0x391   : > { %p1363_p9 = scmp.ge.s32.totalorder %s1048_s21, 2  ;;  %s611_s6 = scalar_lea.sflag [#allocation4], %s610_s11 }
 0x393   : > { %p811_p12 = pnand %p1363_p9, %p1362_p7 }
 0x395   : > { %1031 = dma.done.wait (!%p811_p12), %s611_s6, 512  }
 0x396   : > { %1033 = vsyncadd (!%p811_p12), %s611_s6, 4294966784  ;;  %p19_p1 = scmp.ge.s32.totalorder %s1204_s29, 4   ;;  %s1364_s18 = smov %s1040_s19 }
 0x397   : > { %s1365_s19 = smov %s1044_s20  ;;  %s1366_s20 = smov %s1220_s27 }
 0x398   : > { %s1367_s21 = smov %s1204_s29  ;;  %21 = sbr.rel (!%p19_p1) target bundleno = 6 (0x6), region = 93 }
 0x39f   :  { %616 = vsyncpa [#allocation3], 1 }
 0x3a0   :  { %618 = vsyncpa [#allocation3 + $0x1], 1 }
 0x3a1   :  { %619 = vsyncpa [#allocation6], 1 }
 0x3a2   :  { %620 = vsyncpa [#allocation4], 1 }
 0x3a3   :  { %622 = vsyncpa [#allocation4 + $0x1], 1 }

</bundles_post_ra>
